<compile_context>
chip_gen: v7x
topology: tpu7x:2x2x1
jax: 0.10.0
libtpu: 0.0.40
codegen_flags: <defaults>
</compile_context>

<pallas_src>
import jax
import jax.numpy as jnp
from jax.experimental import pallas as pl
from jax.experimental.pallas import tpu as pltpu


def _round_up(v, m):
    return ((v + m - 1) // m) * m


def _vmem_limit_bytes():
    """Generation-aware explicit VMEM limit (bytes), with headroom."""
    try:
        info = pltpu.get_tpu_info()
        cap = int(getattr(info, "vmem_capacity_bytes", 0) or 0)
    except Exception:
        cap = 0
    if cap <= 0:
        cap = 64 * 1024 * 1024  # conservative fallback: smallest physical VMEM (v7x)
    # ~30% headroom for compiler scratch; never request more than 96 MiB.
    # v5e/v6e (128 MiB phys) -> ~90 MiB; v7x (64 MiB phys) -> ~45 MiB.
    return min(int(cap * 0.70), 96 * 1024 * 1024)


_VMEM_LIMIT = _vmem_limit_bytes()


def _pick_tiles(n, hw_pad, c_in, c_out, itemsize, vmem_limit):
    """Pick (nb, t): batch-fold count and spatial tile (lanes).

    Accounts for sublane padding (8 rows for f32, 16 for bf16, 32 for 8-bit)
    and the VMEM-resident weight/bias blocks; keeps headroom under vmem_limit.
    """
    sub = max(1, 32 // max(1, itemsize))          # sublane packing factor
    ci_p = _round_up(c_in, sub)
    co_p = _round_up(c_out, sub)

    # Resident (non-pipelined) blocks: weight (c_out, c_in) in x dtype and
    # bias (c_out, 1) in f32; both pad to (sublane, 128) tiles in VMEM.
    resident = (co_p * _round_up(c_in, 128) * itemsize
                + _round_up(c_out, 8) * 128 * 4)
    budget = int(vmem_limit * 0.85) - resident

    def blocks_bytes(nb, t):
        # double-buffered input + output blocks, sublane-padded channels
        return 2 * nb * (ci_p + co_p) * t * itemsize

    # --- spatial tile: largest 128-multiple divisor of hw_pad that fits ---
    candidates = (hw_pad, 65536, 32768, 16384, 8192, 4096,
                  2048, 1024, 512, 256, 128)
    t = 128
    for cand in candidates:
        if hw_pad % cand == 0 and blocks_bytes(1, cand) <= budget:
            t = cand
            break
    steps_hw = hw_pad // t

    # --- batch folding for small feature maps (keep per-step DMA large) ---
    nb = 1
    if hw_pad <= 4096 and n > 1:
        # keep at least min_steps total grid steps so both v7x TCs get work
        # and the pipeline can still double-buffer
        min_steps = min(4, n * steps_hw)
        for cand in range(n, 1, -1):
            if n % cand != 0:
                continue
            if (n // cand) * steps_hw < min_steps:
                continue
            if blocks_bytes(cand, t) > min(budget, 16 * 1024 * 1024):
                continue
            nb = cand
            break

    return nb, t


def _conv1x1_kernel(x_ref, w_ref, b_ref, o_ref):
    # x_ref: (NB, C_in, T)  w_ref: (C_out, C_in)  b_ref: (C_out, 1)
    # o_ref: (NB, C_out, T)
    w = w_ref[...]
    b = b_ref[...]
    for i in range(x_ref.shape[0]):  # NB is a small trace-time constant
        acc = jnp.dot(w, x_ref[i], preferred_element_type=jnp.float32)
        o_ref[i] = (acc + b).astype(o_ref.dtype)


@jax.jit
def out_conv(x, weight, bias):
    """OutConv forward: 1x1 Conv2d with bias over NCHW input.

    x:      (N, C_in, H, W)
    weight: (C_out, C_in, 1, 1)   (PyTorch Conv2d layout)
    bias:   (C_out,)
    returns (N, C_out, H, W)
    """
    n, c_in, h, w_dim = x.shape
    c_out = weight.shape[0]
    hw = h * w_dim
    itemsize = jnp.dtype(x.dtype).itemsize

    # Pad HW to a friendly lane multiple (1024 when large enough, else 128) so
    # the spatial block never has to cover an unaligned full extent.
    hw_pad = _round_up(hw, 1024) if hw >= 1024 else _round_up(hw, 128)

    x2 = x.reshape(n, c_in, hw)
    if hw_pad != hw:
        x2 = jnp.pad(x2, ((0, 0), (0, 0), (0, hw_pad - hw)))
    w2 = weight.reshape(c_out, c_in).astype(x.dtype)
    b2 = bias.reshape(c_out, 1).astype(jnp.float32)

    nb, t = _pick_tiles(n, hw_pad, c_in, c_out, itemsize, _VMEM_LIMIT)
    grid = (n // nb, hw_pad // t)

    cost = pl.CostEstimate(
        flops=2 * n * hw_pad * c_in * c_out,
        transcendentals=0,
        bytes_accessed=((c_in + c_out) * n * hw_pad * itemsize
                        + c_out * c_in * itemsize + c_out * 4),
    )

    out2 = pl.pallas_call(
        _conv1x1_kernel,
        out_shape=jax.ShapeDtypeStruct((n, c_out, hw_pad), x.dtype),
        grid_spec=pltpu.PrefetchScalarGridSpec(
            num_scalar_prefetch=0,
            grid=grid,
            in_specs=[
                # batch folded (nb per block); spatial tiled along lanes
                pl.BlockSpec((nb, c_in, t), lambda ni, si: (ni, 0, si)),
                # weight / bias: constant index map -> resident in VMEM
                pl.BlockSpec((c_out, c_in), lambda ni, si: (0, 0)),
                pl.BlockSpec((c_out, 1), lambda ni, si: (0, 0)),
            ],
            out_specs=pl.BlockSpec((nb, c_out, t), lambda ni, si: (ni, 0, si)),
        ),
        compiler_params=pltpu.CompilerParams(
            dimension_semantics=("parallel", "parallel"),
            vmem_limit_bytes=_VMEM_LIMIT,
        ),
        cost_estimate=cost,
    )(x2, w2, b2)

    if hw_pad != hw:
        out2 = out2[:, :, :hw]
    return out2.reshape(n, c_out, h, w_dim)


if __name__ == "__main__":
    key = jax.random.PRNGKey(0)
    k_x, k_w, k_b = jax.random.split(key, 3)

    # Small shapes consistent with OutConv: batch=2, in_channels=4,
    # out_channels=2, spatial=16x16, NCHW.
    n, c_in, c_out, h, w = 2, 4, 2, 16, 16
    x = jax.random.normal(k_x, (n, c_in, h, w), dtype=jnp.float32)
    weight = jax.random.normal(k_w, (c_out, c_in, 1, 1), dtype=jnp.float32) * 0.1
    bias = jax.random.normal(k_b, (c_out,), dtype=jnp.float32) * 0.1

    y = out_conv(x, weight, bias)
    y = jax.block_until_ready(y)

    # Reference 1x1 conv.
    ref = (
        jnp.einsum("oc,nchw->nohw", weight.reshape(c_out, c_in), x)
        + bias[None, :, None, None]
    )
    assert y.shape == (n, c_out, h, w) and y.dtype == x.dtype
    assert bool(jnp.allclose(y, ref, rtol=1e-5, atol=1e-5)), float(
        jnp.max(jnp.abs(y - ref))
    )

    print("KERNEL_OK")
</pallas_src>

<mosaic_0001>
module attributes {stable_mosaic.version = 11 : i64} {
  func.func @_conv1x1_kernel(%arg0: i32, %arg1: i32, %arg2: memref<1x4x256xf32, #tpu.memory_space<vmem>>, %arg3: memref<2x4xf32, #tpu.memory_space<vmem>>, %arg4: memref<2x1xf32, #tpu.memory_space<vmem>>, %arg5: memref<1x2x256xf32, #tpu.memory_space<vmem>>) attributes {dimension_semantics = [#tpu.dimension_semantics<parallel>, #tpu.dimension_semantics<parallel>], iteration_bounds = array<i64: 2, 1>, scalar_prefetch = 0 : i64, scratch_operands = 0 : i64, tpu.core_type = #tpu.core_type<tc>, window_params = [{transform_indices = @transform_0, window_bounds = array<i64: 1, 4, 256>}, {pipeline_mode = #tpu.pipeline_mode<synchronous>, transform_indices = @transform_1, window_bounds = array<i64: 2, 4>}, {pipeline_mode = #tpu.pipeline_mode<synchronous>, transform_indices = @transform_2, window_bounds = array<i64: 2, 1>}, {transform_indices = @transform_3, window_bounds = array<i64: 1, 2, 256>}]} {
    %c0 = arith.constant 0 : index
    %c0_0 = arith.constant 0 : index
    %0 = vector.load %arg3[%c0, %c0_0] : memref<2x4xf32, #tpu.memory_space<vmem>>, vector<2x4xf32>
    %c0_1 = arith.constant 0 : index
    %c0_2 = arith.constant 0 : index
    %1 = vector.load %arg4[%c0_1, %c0_2] : memref<2x1xf32, #tpu.memory_space<vmem>>, vector<2x1xf32>
    %c0_3 = arith.constant 0 : index
    %c0_4 = arith.constant 0 : index
    %c0_5 = arith.constant 0 : index
    %2 = vector.load %arg2[%c0_3, %c0_4, %c0_5] : memref<1x4x256xf32, #tpu.memory_space<vmem>>, vector<1x4x256xf32>
    %3 = vector.shape_cast %2 : vector<1x4x256xf32> to vector<4x256xf32>
    %cst = arith.constant dense<0.000000e+00> : vector<2x256xf32>
    %4 = tpu.matmul %0, %3, %cst {dimension_numbers = #tpu.dot_dimension_numbers<[1], [0], [0], [1], [0, 0, 1, 1], [], []>} : vector<2x4xf32>, vector<4x256xf32>, vector<2x256xf32> -> vector<2x256xf32>
    %5 = vector.broadcast %1 : vector<2x1xf32> to vector<2x256xf32>
    %6 = arith.addf %4, %5 : vector<2x256xf32>
    %c0_6 = arith.constant 0 : index
    %c0_7 = arith.constant 0 : index
    %c0_8 = arith.constant 0 : index
    %7 = vector.load %arg5[%c0_6, %c0_7, %c0_8] : memref<1x2x256xf32, #tpu.memory_space<vmem>>, vector<1x2x256xf32>
    %8 = vector.shape_cast %7 : vector<1x2x256xf32> to vector<2x256xf32>
    %9 = vector.shape_cast %6 : vector<2x256xf32> to vector<1x2x256xf32>
    tpu.vector_store %arg5[%c0_6, %c0_7, %c0_8], %9 {strides = array<i32>} : memref<1x2x256xf32, #tpu.memory_space<vmem>>, vector<1x2x256xf32>,
    return
  }
  func.func @transform_0(%arg0: i32, %arg1: i32) -> (i32, i32, i32) {
    %c0_i32 = arith.constant 0 : i32
    %c0_i32_0 = arith.constant 0 : i32
    return %arg0, %c0_i32, %arg1 : i32, i32, i32
  }
  func.func @transform_1(%arg0: i32, %arg1: i32) -> (i32, i32) {
    %c0_i32 = arith.constant 0 : i32
    %c0_i32_0 = arith.constant 0 : i32
    %c0_i32_1 = arith.constant 0 : i32
    return %c0_i32, %c0_i32_0 : i32, i32
  }
  func.func @transform_2(%arg0: i32, %arg1: i32) -> (i32, i32) {
    %c0_i32 = arith.constant 0 : i32
    %c0_i32_0 = arith.constant 0 : i32
    %c0_i32_1 = arith.constant 0 : i32
    return %c0_i32, %c0_i32_0 : i32, i32
  }
  func.func @transform_3(%arg0: i32, %arg1: i32) -> (i32, i32, i32) {
    %c0_i32 = arith.constant 0 : i32
    %c0_i32_0 = arith.constant 0 : i32
    return %arg0, %c0_i32, %arg1 : i32, i32, i32
  }
}

</mosaic_0001>

<bundles_post_ra>
// kernel: out_conv.1
= control target key start
LH: loop header
LB: loop body
LE: loop exit
PB: predicated region body
PF: predicated region fallthrough
CT: control target
= control target key end

     0   :  { %s490_s12 = smov 0   ;;  %s492_s13 = smov 0   ;;  %s529_s0 = inlined_call_operand.vmem [shape: f32[2,4,256], index: 0, kind: input, shape index: {}]   ;;  %s530_s1 = inlined_call_operand.vmem [shape: f32[2,4], index: 1, kind: input, shape index: {}]   ;;  %s531_s2 = inlined_call_operand.vmem [shape: f32[2,1], index: 2, kind: input, shape index: {}]   ;;  %s532_s3 = inlined_call_operand.vmem [shape: f32[2,2,256], index: 3, kind: output, shape index: {}]  }
   0x1   :  { %s494_s14 = smov 0  }
   0x2 LB: > { %s25_s15 = sadd.s32 1, %s462_s13  ;;  %p403_p0 = scmp.ge.s32.totalorder %s466_s14, 1  ;;  %s466_s14 = sphi %s494_s14, %s13_s14   ;;  %s462_s13 = sphi %s492_s13, %s534_s13   ;;  %s458_s12 = sphi %s490_s12, %s533_s12  }
   0x3   : > { %p27_p1 = scmp.ge.s32.totalorder %s25_s15, 2  ;;  %p158_p2 = scmp.lt.s32.totalorder %s466_s14, 3 }
   0x5   : > { %s536_s15 = smov (%p27_p1, %s25_s15), 0  ;;  %p159_p3 = pnand %p403_p0, %p158_p2 }
   0x6   : > { %p191_p4 = scmp.lt.s32.totalorder (!%p159_p3), %s458_s12, 1  ;;  %v468_v0 = vmov (!%p159_p3), 0.0   ;;  %v211_v1 = vld [vmem:[%s531_s2] sm:$0x3] (!%p159_p3)  ;;  %v469_v2 = vmov (!%p159_p3), 0   ;;  %vm224_vm0 = vcmask (!%p159_p3), 1043456  }
   0x7   : > { %162 = sbr.rel (%p159_p3) target bundleno = 240 (0xf0), region = 32  ;;  %293 = vmatprep.mubr.f32.mxu0 (!%p159_p3), %v468_v0  ;;  %442 = vset.pattern.permute.xlu0 (!%p159_p3), %v469_v2  ;;  %v210_v5 = vld [vmem:[%s530_s1] sm:$0x3] (!%p159_p3)  ;;  %vm220_vm1 = vcmask (!%p159_p3), 31744  }
   0x8   : > { %215 = vperm.xlu0 (!%p159_p3), %442, %v211_v1  }
   0xe   : > { %s538_s12 = smov (!%p191_p4, %s458_s12), 1 }
   0xf   : > { %s414_s18 = sshll.u32 %s538_s12, 3  ;;  %s415_s24 = sshll.u32 %s538_s12, 2 }
  0x10   : > { %s198_s21 = scalar_lea.vmem %s529_s0, %s414_s18  ;;  %s208_s27 = scalar_lea.vmem %s532_s3, %s415_s24 }
  0x11   : > { %v212_v3 = vld [vmem:[%s198_s21] sm:$0xff] }
  0x12   : > { %v219_v4 = vcombine.high %v212_v3, %v212_v3 }
  0x14   : > { %408 = vmatprep.subr.msk.mxu0 %vm224_vm0, %v219_v4 }
  0x15   : > { %409 = vmatpush1.msk.msra.mxu0 %vm224_vm0, %v212_v3 }
  0x16   : > { %410 = vmatmul.mubr.msk.f32.vlgmr.msra.gmra.mrb[0].mxu0 %vm220_vm1, %v210_v5 }
  0x87   : > { %v216_v6 = vpop.permute.xlu0 %215 }
  0xe9   : > { %v295_v7 = vpop.f32.mrb[0].mxu0 }
  0xea   : > { %v296_v8 = vadd.f32 %v295_v7, %v216_v6  ;;  %v297_v9 = vpop.f32.mrb[1].mxu0 }
  0xeb   : > { %v298_v10 = vadd.f32 %v297_v9, %v216_v6 }
  0xed   : > { %v302_v11 = vcombine.low %v296_v8, %v298_v10 }
  0xef   : > { %411 = vst.sshfl [vmem:[%s208_s27] sm:$0x33 pattern:$0x76325410] %v302_v11 }
  0xf0 PF: > { %s13_s14 = sadd.s32 1, %s466_s14   ;;  %s533_s12 = smov %s462_s13 }
  0xf1   : > { %p10_p5 = scmp.ge.s32.totalorder %s13_s14, 4   ;;  %s534_s13 = smov %s536_s15 }
  0xf3   :  { %12 = sbr.rel (!%p10_p5) target bundleno = 2 (0x2), region = 62 }

</bundles_post_ra>
